<compile_context>
chip_gen: v6e
topology: v6e:2x2x1
jax: 0.10.0
libtpu: 0.0.40
codegen_flags: <defaults>
</compile_context>

<pallas_src>
import jax
import jax.numpy as jnp
from jax import lax
from jax.experimental import pallas as pl
from jax.experimental.pallas import tpu as pltpu


def _round_up(x: int, m: int) -> int:
    return pl.cdiv(x, m) * m


def soft_cross_entropy_loss(y_hat, y, *, tile_rows=None):
    n, c = y_hat.shape
    c_pad = _round_up(c, 128)

    if tile_rows is None:
        # <= ~1M elements per input tile: 2 inputs x 2 buffers x 4 B stays
        # well under 32 MiB scoped VMEM on every generation (v5e/v6e/v7x).
        tm_cap = max(8, ((1 << 20) // c_pad) // 8 * 8)
        tm = min(1024, tm_cap, _round_up(n, 8))
    else:
        tm = _round_up(int(tile_rows), 8)
    n_pad = _round_up(n, tm)
    num_tiles = n_pad // tm

    yh = y_hat
    yy = y
    if (n_pad, c_pad) != (n, c):
        # y_hat padding: very negative -> exp underflows to 0, never -inf (so
        # x*y stays finite). y padding: 0 -> no sum / -1-sentinel contribution.
        yh = jnp.pad(y_hat, ((0, n_pad - n), (0, c_pad - c)),
                     constant_values=jnp.asarray(-1e30, y_hat.dtype))
        yy = jnp.pad(y, ((0, n_pad - n), (0, c_pad - c)),
                     constant_values=jnp.asarray(0.0, y.dtype))

    def kernel(yhat_ref, y_ref, out_ref):
        x = yhat_ref[...].astype(jnp.float32)          # (TM, C_pad)
        t = y_ref[...].astype(jnp.float32)             # (TM, C_pad)

        # One pass of rowwise (lane) reductions over the tile.
        m = jnp.max(x, axis=1, keepdims=True)                          # (TM, 1)
        sum_exp = jnp.sum(jnp.exp(x - m), axis=1, keepdims=True)       # (TM, 1)
        sum_xy = jnp.sum(x * t, axis=1, keepdims=True)                 # (TM, 1)
        sum_y = jnp.sum(t, axis=1, keepdims=True)                      # (TM, 1)
        has_neg1 = jnp.any(t == -1.0, axis=1, keepdims=True)           # (TM, 1)

        lse = m + jnp.log(sum_exp)                                     # (TM, 1)
        # -sum(log_softmax(x) * y) == lse * sum(y) - sum(x * y)
        losses = lse * sum_y - sum_xy                                  # (TM, 1)

        # Zero masked rows (-1 sentinel) and rows beyond the real batch, so
        # they contribute neither to the sum nor to the nonzero count.
        row = pl.program_id(0) * tm + lax.broadcasted_iota(jnp.int32, (tm, 1), 0)
        drop = has_neg1 | (row >= n)
        losses = jnp.where(drop, 0.0, losses)

        total = jnp.sum(losses)
        count = jnp.sum((losses != 0.0).astype(jnp.float32))

        # Lane-dense per-tile partials: total in [0, 0], count in [0, 1].
        sub = lax.broadcasted_iota(jnp.int32, (8, 128), 0)
        lane = lax.broadcasted_iota(jnp.int32, (8, 128), 1)
        out_ref[...] = jnp.where(
            sub == 0,
            jnp.where(lane == 0, total, jnp.where(lane == 1, count, 0.0)),
            0.0,
        )

    bytes_in = yh.size * yh.dtype.itemsize + yy.size * yy.dtype.itemsize
    cost = pl.CostEstimate(
        flops=6 * n_pad * c_pad,
        transcendentals=n_pad * c_pad,
        bytes_accessed=bytes_in + num_tiles * 8 * 128 * 4,
    )

    partials = pl.pallas_call(
        kernel,
        out_shape=jax.ShapeDtypeStruct((num_tiles, 8, 128), jnp.float32),
        grid_spec=pltpu.PrefetchScalarGridSpec(
            num_scalar_prefetch=0,
            grid=(num_tiles,),
            in_specs=[
                pl.BlockSpec((tm, c_pad), lambda i: (i, 0)),
                pl.BlockSpec((tm, c_pad), lambda i: (i, 0)),
            ],
            out_specs=pl.BlockSpec((None, 8, 128), lambda i: (i, 0, 0)),
        ),
        compiler_params=pltpu.CompilerParams(
            dimension_semantics=("parallel",),
            vmem_limit_bytes=32 * 1024 * 1024,
        ),
        cost_estimate=cost,
    )(yh, yy)

    total = jnp.sum(partials[:, 0, 0])
    count = jnp.sum(partials[:, 0, 1])
    return total / (count + 1e-6)


class SoftCrossEntropyLoss:
    def __init__(self, weights=None):
        # `weights` is unused in the reference forward(); kept for API parity.
        self.weights = weights

    def __call__(self, y_hat, y):
        return soft_cross_entropy_loss(y_hat, y)


def _reference(y_hat, y):
    logp = jax.nn.log_softmax(y_hat.astype(jnp.float32), axis=1)
    losses = -jnp.sum(logp * y, axis=1)
    mask = jnp.any(y == -1.0, axis=1)
    losses = jnp.where(mask, 0.0, losses)
    return losses.sum() / ((losses != 0.0).sum() + 1e-6)


if __name__ == "__main__":
    key = jax.random.PRNGKey(0)
    k1, k2, k3, k4 = jax.random.split(key, 4)

    # Test 1: lane-aligned single-tile case (N=8 rows, C=128 classes).
    N, C = 8, 128
    y_hat = jax.random.normal(k1, (N, C), dtype=jnp.float32)
    y = jax.nn.softmax(jax.random.normal(k2, (N, C), dtype=jnp.float32), axis=1)
    y = y.at[0, :].set(-1.0)       # row fully ignored via -1 sentinel
    y = y.at[3, 5].set(-1.0)       # single -1 also masks the whole row

    loss_fn = SoftCrossEntropyLoss(weights=None)
    loss = jax.block_until_ready(loss_fn(y_hat, y))
    ref = _reference(y_hat, y)
    assert jnp.allclose(loss, ref, rtol=1e-4, atol=1e-5), (loss, ref)

    # Test 2: multi-tile grid + padding path (N=20, C=192; forced 8-row tiles
    # -> 3 grid steps, 4 padded rows, 64 padded class columns).
    N2, C2 = 20, 192
    y_hat2 = jax.random.normal(k3, (N2, C2), dtype=jnp.float32)
    y2 = jax.nn.softmax(jax.random.normal(k4, (N2, C2), dtype=jnp.float32), axis=1)
    y2 = y2.at[2, :].set(-1.0)
    y2 = y2.at[11, 7].set(-1.0)
    loss2 = jax.block_until_ready(soft_cross_entropy_loss(y_hat2, y2, tile_rows=8))
    ref2 = _reference(y_hat2, y2)
    assert jnp.allclose(loss2, ref2, rtol=1e-4, atol=1e-5), (loss2, ref2)

    print("KERNEL_OK")
</pallas_src>

<mosaic_0001>
module attributes {stable_mosaic.version = 11 : i64} {
  func.func @kernel(%arg0: i32, %arg1: memref<8x128xf32, #tpu.memory_space<vmem>>, %arg2: memref<8x128xf32, #tpu.memory_space<vmem>>, %arg3: memref<1x8x128xf32, #tpu.memory_space<vmem>>) attributes {dimension_semantics = [#tpu.dimension_semantics<parallel>], iteration_bounds = array<i64: 1>, scalar_prefetch = 0 : i64, scratch_operands = 0 : i64, tpu.core_type = #tpu.core_type<tc>, window_params = [{transform_indices = @transform_0, window_bounds = array<i64: 8, 128>}, {transform_indices = @transform_1, window_bounds = array<i64: 8, 128>}, {transform_indices = @transform_2, window_bounds = array<i64: 1, 8, 128>}]} {
    %c0 = arith.constant 0 : index
    %c0_0 = arith.constant 0 : index
    %0 = vector.load %arg1[%c0, %c0_0] : memref<8x128xf32, #tpu.memory_space<vmem>>, vector<8x128xf32>
    %c0_1 = arith.constant 0 : index
    %c0_2 = arith.constant 0 : index
    %1 = vector.load %arg2[%c0_1, %c0_2] : memref<8x128xf32, #tpu.memory_space<vmem>>, vector<8x128xf32>
    %cst = arith.constant dense<0xFF800000> : vector<8xf32>
    %2 = vector.multi_reduction <maximumf>, %0, %cst [1] : vector<8x128xf32> to vector<8xf32>
    %3 = vector.shape_cast %2 : vector<8xf32> to vector<8x1xf32>
    %4 = vector.broadcast %3 : vector<8x1xf32> to vector<8x128xf32>
    %5 = arith.subf %0, %4 : vector<8x128xf32>
    %6 = math.exp %5 : vector<8x128xf32>
    %cst_3 = arith.constant dense<0.000000e+00> : vector<8xf32>
    %7 = vector.multi_reduction <add>, %6, %cst_3 [1] : vector<8x128xf32> to vector<8xf32>
    %8 = vector.shape_cast %7 : vector<8xf32> to vector<8x1xf32>
    %9 = arith.mulf %0, %1 : vector<8x128xf32>
    %cst_4 = arith.constant dense<0.000000e+00> : vector<8xf32>
    %10 = vector.multi_reduction <add>, %9, %cst_4 [1] : vector<8x128xf32> to vector<8xf32>
    %11 = vector.shape_cast %10 : vector<8xf32> to vector<8x1xf32>
    %cst_5 = arith.constant dense<0.000000e+00> : vector<8xf32>
    %12 = vector.multi_reduction <add>, %1, %cst_5 [1] : vector<8x128xf32> to vector<8xf32>
    %13 = vector.shape_cast %12 : vector<8xf32> to vector<8x1xf32>
    %cst_6 = arith.constant -1.000000e+00 : f32
    %14 = vector.broadcast %cst_6 : f32 to vector<8x128xf32>
    %15 = arith.cmpf oeq, %1, %14 : vector<8x128xf32>
    %cst_7 = arith.constant 1.000000e+00 : f32
    %cst_8 = arith.constant 0.000000e+00 : f32
    %16 = vector.broadcast %cst_7 : f32 to vector<8x128xf32>
    %17 = vector.broadcast %cst_8 : f32 to vector<8x128xf32>
    %18 = arith.select %15, %16, %17 : vector<8x128xi1>, vector<8x128xf32>
    %cst_9 = arith.constant dense<0xFF800000> : vector<8xf32>
    %19 = vector.multi_reduction <maximumf>, %18, %cst_9 [1] : vector<8x128xf32> to vector<8xf32>
    %cst_10 = arith.constant 0.000000e+00 : f32
    %20 = vector.broadcast %cst_10 : f32 to vector<8xf32>
    %21 = arith.cmpf ogt, %19, %20 : vector<8xf32>
    %22 = vector.shape_cast %21 : vector<8xi1> to vector<8x1xi1>
    %23 = math.log %8 : vector<8x1xf32>
    %24 = arith.addf %3, %23 : vector<8x1xf32>
    %25 = arith.mulf %24, %13 : vector<8x1xf32>
    %26 = arith.subf %25, %11 : vector<8x1xf32>
    %c8_i32 = arith.constant 8 : i32
    %27 = arith.muli %arg0, %c8_i32 : i32
    %28 = tpu.iota {dimensions = array<i32: 0>} : vector<8x1xi32>
    %29 = vector.broadcast %27 : i32 to vector<8x1xi32>
    %30 = arith.addi %29, %28 : vector<8x1xi32>
    %c8_i32_11 = arith.constant 8 : i32
    %31 = vector.broadcast %c8_i32_11 : i32 to vector<8x1xi32>
    %32 = arith.cmpi sge, %30, %31 : vector<8x1xi32>
    %33 = arith.ori %22, %32 : vector<8x1xi1>
    %cst_12 = arith.constant 0.000000e+00 : f32
    %34 = vector.broadcast %cst_12 : f32 to vector<8x1xf32>
    %35 = arith.select %33, %34, %26 : vector<8x1xi1>, vector<8x1xf32>
    %36 = vector.shape_cast %35 : vector<8x1xf32> to vector<1x8x1xf32>
    %cst_13 = arith.constant dense<0.000000e+00> : vector<1xf32>
    %37 = vector.multi_reduction <add>, %36, %cst_13 [1, 2] : vector<1x8x1xf32> to vector<1xf32>
    %38 = vector.shape_cast %37 : vector<1xf32> to vector<1x1x1xf32>
    %39 = vector.extract %38[0, 0, 0] : f32 from vector<1x1x1xf32>
    %cst_14 = arith.constant 0.000000e+00 : f32
    %40 = vector.broadcast %cst_14 : f32 to vector<8x1xf32>
    %41 = arith.cmpf one, %35, %40 : vector<8x1xf32>
    %42 = arith.extui %41 : vector<8x1xi1> to vector<8x1xi32>
    %43 = arith.sitofp %42 : vector<8x1xi32> to vector<8x1xf32>
    %44 = vector.shape_cast %43 : vector<8x1xf32> to vector<1x8x1xf32>
    %cst_15 = arith.constant dense<0.000000e+00> : vector<1xf32>
    %45 = vector.multi_reduction <add>, %44, %cst_15 [1, 2] : vector<1x8x1xf32> to vector<1xf32>
    %46 = vector.shape_cast %45 : vector<1xf32> to vector<1x1x1xf32>
    %47 = vector.extract %46[0, 0, 0] : f32 from vector<1x1x1xf32>
    %48 = tpu.iota {dimensions = array<i32: 0>} : vector<8x128xi32>
    %49 = tpu.iota {dimensions = array<i32: 1>} : vector<8x128xi32>
    %c0_i32 = arith.constant 0 : i32
    %50 = vector.broadcast %c0_i32 : i32 to vector<8x128xi32>
    %51 = arith.cmpi eq, %48, %50 : vector<8x128xi32>
    %c0_i32_16 = arith.constant 0 : i32
    %52 = vector.broadcast %c0_i32_16 : i32 to vector<8x128xi32>
    %53 = arith.cmpi eq, %49, %52 : vector<8x128xi32>
    %c1_i32 = arith.constant 1 : i32
    %54 = vector.broadcast %c1_i32 : i32 to vector<8x128xi32>
    %55 = arith.cmpi eq, %49, %54 : vector<8x128xi32>
    %cst_17 = arith.constant 0.000000e+00 : f32
    %56 = vector.broadcast %47 : f32 to vector<8x128xf32>
    %57 = vector.broadcast %cst_17 : f32 to vector<8x128xf32>
    %58 = arith.select %55, %56, %57 : vector<8x128xi1>, vector<8x128xf32>
    %59 = vector.broadcast %39 : f32 to vector<8x128xf32>
    %60 = arith.select %53, %59, %58 : vector<8x128xi1>, vector<8x128xf32>
    %cst_18 = arith.constant 0.000000e+00 : f32
    %61 = vector.broadcast %cst_18 : f32 to vector<8x128xf32>
    %62 = arith.select %51, %60, %61 : vector<8x128xi1>, vector<8x128xf32>
    %c0_19 = arith.constant 0 : index
    %c0_20 = arith.constant 0 : index
    %c0_21 = arith.constant 0 : index
    %63 = vector.load %arg3[%c0_19, %c0_20, %c0_21] : memref<1x8x128xf32, #tpu.memory_space<vmem>>, vector<1x8x128xf32>
    %64 = vector.shape_cast %63 : vector<1x8x128xf32> to vector<8x128xf32>
    %65 = vector.shape_cast %62 : vector<8x128xf32> to vector<1x8x128xf32>
    tpu.vector_store %arg3[%c0_19, %c0_20, %c0_21], %65 {strides = array<i32>} : memref<1x8x128xf32, #tpu.memory_space<vmem>>, vector<1x8x128xf32>,
    return
  }
  func.func @transform_0(%arg0: i32) -> (i32, i32) {
    %c0_i32 = arith.constant 0 : i32
    %c0_i32_0 = arith.constant 0 : i32
    return %arg0, %c0_i32 : i32, i32
  }
  func.func @transform_1(%arg0: i32) -> (i32, i32) {
    %c0_i32 = arith.constant 0 : i32
    %c0_i32_0 = arith.constant 0 : i32
    return %arg0, %c0_i32 : i32, i32
  }
  func.func @transform_2(%arg0: i32) -> (i32, i32, i32) {
    %c0_i32 = arith.constant 0 : i32
    %c0_i32_0 = arith.constant 0 : i32
    %c0_i32_1 = arith.constant 0 : i32
    return %arg0, %c0_i32, %c0_i32_0 : i32, i32, i32
  }
}

</mosaic_0001>

<bundles_post_ra>
// kernel: tpu_custom_call.1
= control target key start
LH: loop header
LB: loop body
LE: loop exit
PB: predicated region body
PF: predicated region fallthrough
CT: control target
= control target key end

     0   :  { %7 = vsyncpa [#allocation3], 0  ;;  %s226_s0 = inlined_call_operand.hbm [shape: f32[8,128], index: 0, kind: input, shape index: {}]   ;;  %s227_s1 = inlined_call_operand.hbm [shape: f32[8,128], index: 1, kind: input, shape index: {}]   ;;  %s228_s2 = inlined_call_operand.hbm [shape: f32[1,8,128], index: 2, kind: output, shape index: {}]  }
   0x1   :  { %8 = vsyncpa [#allocation6], 0 }
   0x2   :  { %9 = vsyncpa [#allocation4], 0  ;;  %s198_s9 = smov [#allocation2]   ;;  %s199_s11 = smov [#allocation5]  }
   0x3   :  { %s16_s10 = sshll.u32 %s198_s9, 4  ;;  %s26_s12 = sshll.u32 %s199_s11, 4  ;;  %s17_s10 = int_to_ptr.vmem [resolvable:$true] %s16_s10  ;;  %s27_s12 = int_to_ptr.vmem [resolvable:$true] %s26_s12 }
   0x4   :  { %s140_s13 = scalar_lea.vmem %s17_s10, 128  ;;  %p145_p1 = scmp.lt.s32.totalorder %s17_s10, %s17_s10 }
   0x5   :  { %p141_p0 = scmp.ne.s32.totalorder %s17_s10, %s140_s13  ;;  %p146_p2 = scmp.lt.s32.totalorder %s140_s13, %s140_s13 }
   0x7   :  { %p147_p3 = por %p146_p2, %p145_p1 }
   0x9   :  { %p148_p4 = pnand %p147_p3, %p141_p0 }
   0xb   :  { %151 = shalt.err (!%p148_p4)
}
   0xc   :  { %19 = dma.hbm_to_vmem [thread:$0]  %s226_s0, 128, %s17_s10, [#allocation3]  }
   0xd   :  { %s160_s16 = scalar_lea.vmem %s27_s12, 128  ;;  %p165_p6 = scmp.lt.s32.totalorder %s27_s12, %s27_s12 }
   0xe   :  { %p161_p5 = scmp.ne.s32.totalorder %s27_s12, %s160_s16  ;;  %p166_p7 = scmp.lt.s32.totalorder %s160_s16, %s160_s16 }
  0x10   :  { %p167_p8 = por %p166_p7, %p165_p6 }
  0x12   :  { %p168_p9 = pnand %p167_p8, %p161_p5 }
  0x14   :  { %171 = shalt.err (!%p168_p9)
}
  0x15   :  { %29 = dma.hbm_to_vmem [thread:$0]  %s227_s1, 128, %s27_s12, [#allocation6]  }
  0x16   :  { %192 = dma.done.wait [#allocation3], 128  }
  0x17   :  { %193 = vsyncadd [#allocation3], 4294967168 }
  0x18   :  { %194 = dma.done.wait [#allocation6], 128  }
  0x19   :  { %195 = vsyncadd [#allocation6], 4294967168  ;;  %v36_v0 = vld [vmem:[#allocation2] sm:$0xff]  ;;  %v37_v1 = vld [vmem:[#allocation5] sm:$0xff]  ;;  %v200_v7 = vmov 0.0   ;;  %vm68_vm2 = vcmask 7168   ;;  %v61_v36 = vlaneseq }
  0x1a   :  { %38 = vmax.xlane.f32.xlu0 %v36_v0  ;;  %48 = vadd.xlane.f32.xlu1 %v37_v1  ;;  %v45_v2 = vmul.f32 %v37_v1, %v36_v0  ;;  %vm50_vm0 = vcmp.eq.f32.partialorder %v37_v1, -1.0  ;;  %s201_s19 = smov [#allocation7]  }
  0x1b   :  { %v51_v8 = vsel %vm50_vm0, 1.0, %v200_v7  ;;  %v93_v37 = vand.u32 127, %v61_v36  ;;  %v62_v38 = vshrl.u32 %v61_v36, 7  ;;  %s109_s20 = sshll.u32 %s201_s19, 4  ;;  %s110_s20 = int_to_ptr.vmem [resolvable:$true] %s109_s20 }
  0x1c   :  { %s172_s21 = scalar_lea.vmem %s110_s20, 128  ;;  %p177_p11 = scmp.lt.s32.totalorder %s110_s20, %s110_s20 }
  0x1d   :  { %vm96_vm4 = vcmp.eq.s32.totalorder %v93_v37, 1  ;;  %vm95_vm5 = vcmp.eq.s32.totalorder %v93_v37, 0  ;;  %vm94_vm6 = vcmp.eq.s32.totalorder %v62_v38, 0  ;;  %p173_p10 = scmp.ne.s32.totalorder %s110_s20, %s172_s21  ;;  %p178_p12 = scmp.lt.s32.totalorder %s172_s21, %s172_s21 }
  0x1e   :  { %46 = vadd.xlane.f32.xlu1 %v45_v2 }
  0x1f   :  { %p179_p13 = por %p178_p12, %p177_p11 }
  0x21   :  { %p180_p0 = pnand %p179_p13, %p173_p10 }
  0xa3   :  { %v39_v3 = vpop.xlane.xlu0 %38  ;;  %v49_v10 = vpop.xlane.xlu1 %48 }
  0xa4   :  { %v40_v4 = vsub.f32 %v36_v0, %v39_v3 }
  0xa6   :  { %v41_v5 = vmul.f32 1.442695, %v40_v4 }
  0xa7   :  { %v47_v15 = vpop.xlane.xlu1 %46 }
  0xa8   :  { %128 = vpow2.f32 %v41_v5 }
  0xb5   :  { %v129_v6 = vpop.eup %128 }
  0xb6   :  { %43 = vadd.xlane.f32.xlu0 %v129_v6 }
  0xba   :  { %52 = vmax.xlane.f32.xlu0 %v51_v8 }
 0x13f   :  { %v44_v9 = vpop.xlane.xlu0 %43 }
 0x140   :  { %130 = vlog2.f32 %v44_v9 }
 0x143   :  { %v53_v14 = vpop.xlane.xlu0 %52 }
 0x144   :  { %vm54_vm1 = vcmp.gt.f32.partialorder %v53_v14, 0.0 }
 0x14d   :  { %v131_v11 = vpop.eup %130 }
 0x14e   :  { %v56_v12 = vmul.f32 0.6931472, %v131_v11 }
 0x150   :  { %v57_v13 = vadd.f32 %v56_v12, %v39_v3 }
 0x152   :  { %v58_v16 = vmul.f32 %v57_v13, %v49_v10 }
 0x154   :  { %v59_v17 = vsub.f32 %v58_v16, %v47_v15 }
 0x156   :  { %v67_v18 = vsel %vm54_vm1, 0.0, %v59_v17 }
 0x157   :  { %v69_v19 = vsel %vm68_vm2, %v67_v18, 0.0  ;;  %vm79_vm3 = vcmp.ne.f32.partialorder %v67_v18, 0.0 }
 0x158   :  { %70 = vadd.xlane.f32.xlu1 %v69_v19  ;;  %v119_v20 = vsel %vm79_vm3, 1.0, %v200_v7 }
 0x159   :  { %v82_v21 = vsel %vm68_vm2, %v119_v20, 0.0 }
 0x15a   :  { %83 = vadd.xlane.f32.xlu0 %v82_v21 }
 0x1e1   :  { %v71_v22 = vpop.xlane.xlu1 %70 }
 0x1e2   :  { %v72_v23 = vrot.slane %v71_v22, 4 }
 0x1e3   :  { %v84_v24 = vpop.xlane.xlu0 %83 }
 0x1e4   :  { %v73_v25 = vadd.f32 %v72_v23, %v71_v22  ;;  %v85_v26 = vrot.slane %v84_v24, 4 }
 0x1e6   :  { %v74_v27 = vrot.slane %v73_v25, 2  ;;  %v86_v28 = vadd.f32 %v85_v26, %v84_v24 }
 0x1e8   :  { %v87_v29 = vrot.slane %v86_v28, 2  ;;  %v75_v30 = vadd.f32 %v74_v27, %v73_v25 }
 0x1ea   :  { %v88_v31 = vadd.f32 %v87_v29, %v86_v28  ;;  %v76_v32 = vrot.slane %v75_v30, 1 }
 0x1ec   :  { %v77_v33 = vadd.f32 %v76_v32, %v75_v30  ;;  %v89_v34 = vrot.slane %v88_v31, 1 }
 0x1ee   :  { %120 = vpush %v77_v33  ;;  %v90_v35 = vadd.f32 %v89_v34, %v88_v31 }
 0x1f0   :  { %122 = vpush %v90_v35 }
 0x21f   :  { %s121_s0 = spop %120 }
 0x220   :  { %v99_v40 = vstv %s121_s0 }
 0x221   :  { %s123_s1 = spop %122 }
 0x222   :  { %v97_v39 = vstv %s123_s1 }
 0x223   :  { %v98_v41 = vsel %vm96_vm4, %v97_v39, 0.0 }
 0x224   :  { %v100_v42 = vsel %vm95_vm5, %v99_v40, %v98_v41 }
 0x225   :  { %v101_v43 = vsel %vm94_vm6, %v100_v42, 0.0 }
 0x226   :  { %102 = vst [vmem:[#allocation7] sm:$0xff] %v101_v43 }
 0x227   :  { %183 = shalt.err (!%p180_p0)
}
 0x228   :  { %112 = dma.vmem_to_hbm [thread:$0]  %s110_s20, 128, %s228_s2, [#allocation4]  }
 0x229   :  { %196 = dma.done.wait [#allocation4], 128  }
 0x22a   :  { %197 = vsyncadd [#allocation4], 4294967168 }
 0x22b   :  { %116 = vsyncpa [#allocation3], 1 }
 0x22c   :  { %117 = vsyncpa [#allocation6], 1 }
 0x22d   :  { %118 = vsyncpa [#allocation4], 1 }

</bundles_post_ra>
